<compile_context>
chip_gen: v6e
topology: v6e:2x2x1
jax: 0.10.0
libtpu: 0.0.40
codegen_flags: <defaults>
</compile_context>

<pallas_src>
import functools

import jax
import jax.numpy as jnp
from jax.experimental import pallas as pl
from jax.experimental.pallas import tpu as pltpu


def _pick_vmem_limit():
    """Generation-dependent VMEM budget (v7x: 64 MiB physical, v5e/v6e: 128 MiB)."""
    try:
        cap = int(pltpu.get_tpu_info().vmem_capacity_bytes)
    except Exception:
        cap = 64 * 1024 * 1024
    return int(min(max(cap * 3 // 4, 32 * 1024 * 1024), 100 * 1024 * 1024))


_VMEM_LIMIT = _pick_vmem_limit()


# ------------------------------ Pallas kernel --------------------------------

def _conv_in_relu_kernel(x_ref, w_ref, g_ref, b_ref, o_ref, *,
                         n_dy, row_shift, m, inv_n):
    """Fused conv (vertical-tap matmuls) + InstanceNorm2d(affine) + ReLU.

    x_ref : (1, Cp, P)       bf16  channel-major input; horizontal taps pre-packed
                                   into Cp, spatial flattened row-major on lanes.
    w_ref : (n_dy, Cb, Cp)   bf16  per-vertical-tap weights, pre-transposed.
    g_ref : (Cb, 1)          f32   InstanceNorm gamma for this channel block.
    b_ref : (Cb, 1)          f32   InstanceNorm beta.
    o_ref : (1, Cb, M)             lane-dense output, M = hout*wout on lanes.
    """
    x = x_ref[0]                                             # (Cp, P) bf16, no f32 copy
    acc = jnp.dot(w_ref[0], x[:, 0:m], preferred_element_type=jnp.float32)
    for dy in range(1, n_dy):
        off = dy * row_shift                                 # static lane offset
        acc = acc + jnp.dot(w_ref[dy], x[:, off:off + m],
                            preferred_element_type=jnp.float32)

    # InstanceNorm2d (biased variance, eps=1e-5).  Every lane is a valid pixel, so
    # the stats are plain lane reductions -- no mask, no masked (M,Cout) temporaries.
    mean = jnp.sum(acc, axis=1, keepdims=True) * inv_n       # (Cb, 1)
    cen = acc - mean
    var = jnp.sum(cen * cen, axis=1, keepdims=True) * inv_n  # two-pass: no cancellation
    scale = g_ref[...] * jax.lax.rsqrt(var + 1e-5)
    o_ref[0] = jnp.maximum(cen * scale + b_ref[...], 0.0).astype(o_ref.dtype)


def _conv_in_relu_stage(x_t, w_t, gamma, beta, *, n_dy, row_shift, hout, wout,
                        out_dtype):
    """One fused conv+IN+ReLU stage.

    x_t : (B, Cp, P)        bf16  channel-major flat-spatial input
    w_t : (n_dy, Cout, Cp)  bf16  transposed per-vertical-tap weights
    Returns (B, Cout, hout, wout) in `out_dtype` (NCHW).
    """
    B, Cp, P = x_t.shape
    _, Cout, _ = w_t.shape
    M = hout * wout
    # Second "parallel" grid axis over output-channel blocks (keeps both v7x TCs
    # busy even when B == 1); the image block index ignores it -> fetched once/sample.
    jb = 2 if (Cout >= 16 and (Cout // 2) % 8 == 0) else 1
    cb = Cout // jb

    kern = functools.partial(_conv_in_relu_kernel, n_dy=n_dy,
                             row_shift=row_shift, m=M, inv_n=1.0 / M)
    out = pl.pallas_call(
        kern,
        out_shape=jax.ShapeDtypeStruct((B, Cout, M), out_dtype),
        grid=(B, jb),
        in_specs=[
            pl.BlockSpec((1, Cp, P), lambda b, j: (b, 0, 0)),
            pl.BlockSpec((n_dy, cb, Cp), lambda b, j: (0, j, 0)),
            pl.BlockSpec((cb, 1), lambda b, j: (j, 0)),
            pl.BlockSpec((cb, 1), lambda b, j: (j, 0)),
        ],
        out_specs=pl.BlockSpec((1, cb, M), lambda b, j: (b, j, 0)),
        compiler_params=pltpu.CompilerParams(
            dimension_semantics=("parallel", "parallel"),
            vmem_limit_bytes=_VMEM_LIMIT),
    )(x_t, w_t,
      gamma.reshape(Cout, 1).astype(jnp.float32),
      beta.reshape(Cout, 1).astype(jnp.float32))
    return out.reshape(B, Cout, hout, wout)


# --------------------------------- glue --------------------------------------

def _pack_w1(w):
    """(7,7,nIn,c1) HWIO -> (7, c1, 7*nIn) bf16; per-dy rows ordered dx*nIn + c."""
    kh, kw, cin, cout = w.shape
    wt = w.reshape(kh, kw * cin, cout)                  # [dy, dx*cin + c, co]
    return jnp.transpose(wt, (0, 2, 1)).astype(jnp.bfloat16)


def _pack_w_s2d(w):
    """3x3 stride-2 HWIO weight -> (2, Cout, 8*Cin) bf16 for the equivalent 2-tap
    stride-1 conv over the (space-to-depth + dx-packed) input.
    8*Cin axis ordering: db*4C + (py*2+px)*C + c."""
    kh, kw, C, Co = w.shape
    zero = jnp.zeros((C, Co), w.dtype)
    per_da = []
    for da in range(2):
        blocks = []
        for db in range(2):
            for py in range(2):
                for px in range(2):
                    ky, kx = 2 * da + py, 2 * db + px
                    blocks.append(w[ky, kx] if (ky < kh and kx < kw) else zero)
        per_da.append(jnp.concatenate(blocks, axis=0).T)     # (Co, 8C)
    return jnp.stack(per_da, axis=0).astype(jnp.bfloat16)


def _stride2_conv_in_relu(a, w, gamma, beta, *, out_dtype):
    """Conv2d(3x3, stride 2, pad 1, bias=False) + IN(affine) + ReLU.
    a: (B, C, H, W) NCHW -> (B, Cout, H/2, W/2) NCHW."""
    B, C, Hc, Wc = a.shape
    hout, wout = Hc // 2, Wc // 2
    ap = jnp.pad(a, ((0, 0), (0, 0), (1, 1), (1, 1)))               # zero pad
    s = ap.reshape(B, C, hout + 1, 2, wout + 1, 2)
    s = jnp.transpose(s, (0, 3, 5, 1, 2, 4))                        # (B,py,px,C,a,b)
    s = s.reshape(B, 4 * C, hout + 1, wout + 1)                     # space-to-depth
    sb = jnp.concatenate([s[:, :, :, 0:wout], s[:, :, :, 1:wout + 1]], axis=1)
    x_t = sb.reshape(B, 8 * C, (hout + 1) * wout).astype(jnp.bfloat16)
    return _conv_in_relu_stage(x_t, _pack_w_s2d(w), gamma, beta,
                               n_dy=2, row_shift=wout, hout=hout, wout=wout,
                               out_dtype=out_dtype)


def down_conv_forward(params, x):
    """_downConv.forward.  x: (B, nIn, H, W) NCHW -> (B, nf, H/4, W/4) NCHW."""
    B, nIn, H, W = x.shape

    # stage 1: ReflectionPad2d(3) + Conv2d(nIn, nf/4, 7, bias=False) + IN + ReLU.
    # dx taps are pre-packed into channels -> kernel only handles the 7 dy taps.
    xp = jnp.pad(x.astype(jnp.float32), ((0, 0), (0, 0), (3, 3), (3, 3)),
                 mode="reflect")                                     # (B,nIn,H+6,W+6)
    xdx = jnp.concatenate([xp[:, :, :, dx:dx + W] for dx in range(7)], axis=1)
    x_t = xdx.reshape(B, 7 * nIn, (H + 6) * W).astype(jnp.bfloat16)
    a = _conv_in_relu_stage(x_t, _pack_w1(params["w1"]), params["g1"], params["b1"],
                            n_dy=7, row_shift=W, hout=H, wout=W,
                            out_dtype=jnp.bfloat16)                  # (B, nf/4, H, W)

    # stages 2 & 3: Conv2d(3x3, stride 2, pad 1, bias=False) + IN + ReLU
    a = _stride2_conv_in_relu(a, params["w2"], params["g2"], params["b2"],
                              out_dtype=jnp.bfloat16)                # (B, nf/2, H/2, W/2)
    a = _stride2_conv_in_relu(a, params["w3"], params["g3"], params["b3"],
                              out_dtype=jnp.float32)                 # (B, nf,   H/4, W/4)
    return a                                                         # already NCHW


# ----------------------- parameters & pure-JAX reference ---------------------

def init_down_conv_params(key, nIn=3, nf=32):
    """Synthetic weights matching _downConv shapes (spectralNorm=False: at forward
    time spectral_norm is just the stored weight).  Conv weights are HWIO, bias=False;
    InstanceNorm2d(affine=True) gamma/beta per layer."""
    c1, c2, c3 = nf // 4, nf // 2, nf
    ks = jax.random.split(key, 9)
    r = lambda k, shape, s=0.1: (s * jax.random.normal(k, shape)).astype(jnp.float32)
    return {
        "w1": r(ks[0], (7, 7, nIn, c1)),
        "g1": 1.0 + r(ks[1], (c1,), 0.05), "b1": r(ks[2], (c1,), 0.05),
        "w2": r(ks[3], (3, 3, c1, c2)),
        "g2": 1.0 + r(ks[4], (c2,), 0.05), "b2": r(ks[5], (c2,), 0.05),
        "w3": r(ks[6], (3, 3, c2, c3)),
        "g3": 1.0 + r(ks[7], (c3,), 0.05), "b3": r(ks[8], (c3,), 0.05),
    }


def _reference_down_conv(params, x):
    """Pure-JAX (XLA) reference of the PyTorch module, f32 throughout."""
    def conv(y, w, stride, pad):
        return jax.lax.conv_general_dilated(
            y, w, window_strides=(stride, stride), padding=pad,
            dimension_numbers=("NCHW", "HWIO", "NCHW"))

    def inorm_relu(y, g, b):
        mean = y.mean(axis=(2, 3), keepdims=True)
        var = ((y - mean) ** 2).mean(axis=(2, 3), keepdims=True)
        yn = (y - mean) * jax.lax.rsqrt(var + 1e-5)
        return jax.nn.relu(yn * g[None, :, None, None] + b[None, :, None, None])

    xp = jnp.pad(x, ((0, 0), (0, 0), (3, 3), (3, 3)), mode="reflect")
    y = inorm_relu(conv(xp, params["w1"], 1, "VALID"), params["g1"], params["b1"])
    y = inorm_relu(conv(y, params["w2"], 2, [(1, 1), (1, 1)]), params["g2"], params["b2"])
    y = inorm_relu(conv(y, params["w3"], 2, [(1, 1), (1, 1)]), params["g3"], params["b3"])
    return y


# ----------------------------------- main -------------------------------------

if __name__ == "__main__":
    B, nIn, nf, H, W = 2, 3, 32, 16, 16

    key = jax.random.PRNGKey(0)
    kp, kx = jax.random.split(key)
    params = init_down_conv_params(kp, nIn=nIn, nf=nf)
    x = jax.random.normal(kx, (B, nIn, H, W), dtype=jnp.float32)

    fwd = jax.jit(down_conv_forward)
    out = jax.block_until_ready(fwd(params, x))

    assert out.shape == (B, nf, H // 4, W // 4), out.shape
    assert bool(jnp.all(jnp.isfinite(out)))

    ref = _reference_down_conv(params, x)
    err = float(jnp.max(jnp.abs(out - ref)))
    assert err < 0.3, f"max abs error vs reference: {err}"

    print("KERNEL_OK")
</pallas_src>

<mosaic_0001>
module attributes {stable_mosaic.version = 11 : i64} {
  func.func @_conv_in_relu_kernel(%arg0: i32, %arg1: i32, %arg2: memref<1x21x352xbf16, #tpu.memory_space<vmem>>, %arg3: memref<7x8x21xbf16, #tpu.memory_space<vmem>>, %arg4: memref<8x1xf32, #tpu.memory_space<vmem>>, %arg5: memref<8x1xf32, #tpu.memory_space<vmem>>, %arg6: memref<1x8x256xbf16, #tpu.memory_space<vmem>>) attributes {dimension_semantics = [#tpu.dimension_semantics<parallel>, #tpu.dimension_semantics<parallel>], iteration_bounds = array<i64: 2, 1>, scalar_prefetch = 0 : i64, scratch_operands = 0 : i64, tpu.core_type = #tpu.core_type<tc>, window_params = [{transform_indices = @transform_0, window_bounds = array<i64: 1, 21, 352>}, {transform_indices = @transform_1, window_bounds = array<i64: 7, 8, 21>}, {transform_indices = @transform_2, window_bounds = array<i64: 8, 1>}, {transform_indices = @transform_3, window_bounds = array<i64: 8, 1>}, {transform_indices = @transform_4, window_bounds = array<i64: 1, 8, 256>}]} {
    %c0 = arith.constant 0 : index
    %c0_0 = arith.constant 0 : index
    %c0_1 = arith.constant 0 : index
    %0 = vector.load %arg2[%c0, %c0_0, %c0_1] : memref<1x21x352xbf16, #tpu.memory_space<vmem>>, vector<1x21x352xbf16>
    %1 = vector.shape_cast %0 : vector<1x21x352xbf16> to vector<21x352xbf16>
    %c0_2 = arith.constant 0 : index
    %c0_3 = arith.constant 0 : index
    %c0_4 = arith.constant 0 : index
    %2 = vector.load %arg3[%c0_2, %c0_3, %c0_4] : memref<7x8x21xbf16, #tpu.memory_space<vmem>>, vector<1x8x21xbf16>
    %3 = vector.shape_cast %2 : vector<1x8x21xbf16> to vector<8x21xbf16>
    %4 = vector.extract_strided_slice %1 {offsets = [0, 0], sizes = [21, 256], strides = [1, 1]} : vector<21x352xbf16> to vector<21x256xbf16>
    %cst = arith.constant dense<0.000000e+00> : vector<8x256xf32>
    %5 = tpu.matmul %3, %4, %cst {dimension_numbers = #tpu.dot_dimension_numbers<[1], [0], [0], [1], [0, 0, 1, 1], [], []>} : vector<8x21xbf16>, vector<21x256xbf16>, vector<8x256xf32> -> vector<8x256xf32>
    %c1 = arith.constant 1 : index
    %c0_5 = arith.constant 0 : index
    %c0_6 = arith.constant 0 : index
    %6 = vector.load %arg3[%c1, %c0_5, %c0_6] : memref<7x8x21xbf16, #tpu.memory_space<vmem>>, vector<1x8x21xbf16>
    %7 = vector.shape_cast %6 : vector<1x8x21xbf16> to vector<8x21xbf16>
    %8 = vector.extract_strided_slice %1 {offsets = [0, 16], sizes = [21, 256], strides = [1, 1]} : vector<21x352xbf16> to vector<21x256xbf16>
    %cst_7 = arith.constant dense<0.000000e+00> : vector<8x256xf32>
    %9 = tpu.matmul %7, %8, %cst_7 {dimension_numbers = #tpu.dot_dimension_numbers<[1], [0], [0], [1], [0, 0, 1, 1], [], []>} : vector<8x21xbf16>, vector<21x256xbf16>, vector<8x256xf32> -> vector<8x256xf32>
    %10 = arith.addf %5, %9 : vector<8x256xf32>
    %c2 = arith.constant 2 : index
    %c0_8 = arith.constant 0 : index
    %c0_9 = arith.constant 0 : index
    %11 = vector.load %arg3[%c2, %c0_8, %c0_9] : memref<7x8x21xbf16, #tpu.memory_space<vmem>>, vector<1x8x21xbf16>
    %12 = vector.shape_cast %11 : vector<1x8x21xbf16> to vector<8x21xbf16>
    %13 = vector.extract_strided_slice %1 {offsets = [0, 32], sizes = [21, 256], strides = [1, 1]} : vector<21x352xbf16> to vector<21x256xbf16>
    %cst_10 = arith.constant dense<0.000000e+00> : vector<8x256xf32>
    %14 = tpu.matmul %12, %13, %cst_10 {dimension_numbers = #tpu.dot_dimension_numbers<[1], [0], [0], [1], [0, 0, 1, 1], [], []>} : vector<8x21xbf16>, vector<21x256xbf16>, vector<8x256xf32> -> vector<8x256xf32>
    %15 = arith.addf %10, %14 : vector<8x256xf32>
    %c3 = arith.constant 3 : index
    %c0_11 = arith.constant 0 : index
    %c0_12 = arith.constant 0 : index
    %16 = vector.load %arg3[%c3, %c0_11, %c0_12] : memref<7x8x21xbf16, #tpu.memory_space<vmem>>, vector<1x8x21xbf16>
    %17 = vector.shape_cast %16 : vector<1x8x21xbf16> to vector<8x21xbf16>
    %18 = vector.extract_strided_slice %1 {offsets = [0, 48], sizes = [21, 256], strides = [1, 1]} : vector<21x352xbf16> to vector<21x256xbf16>
    %cst_13 = arith.constant dense<0.000000e+00> : vector<8x256xf32>
    %19 = tpu.matmul %17, %18, %cst_13 {dimension_numbers = #tpu.dot_dimension_numbers<[1], [0], [0], [1], [0, 0, 1, 1], [], []>} : vector<8x21xbf16>, vector<21x256xbf16>, vector<8x256xf32> -> vector<8x256xf32>
    %20 = arith.addf %15, %19 : vector<8x256xf32>
    %c4 = arith.constant 4 : index
    %c0_14 = arith.constant 0 : index
    %c0_15 = arith.constant 0 : index
    %21 = vector.load %arg3[%c4, %c0_14, %c0_15] : memref<7x8x21xbf16, #tpu.memory_space<vmem>>, vector<1x8x21xbf16>
    %22 = vector.shape_cast %21 : vector<1x8x21xbf16> to vector<8x21xbf16>
    %23 = vector.extract_strided_slice %1 {offsets = [0, 64], sizes = [21, 256], strides = [1, 1]} : vector<21x352xbf16> to vector<21x256xbf16>
    %cst_16 = arith.constant dense<0.000000e+00> : vector<8x256xf32>
    %24 = tpu.matmul %22, %23, %cst_16 {dimension_numbers = #tpu.dot_dimension_numbers<[1], [0], [0], [1], [0, 0, 1, 1], [], []>} : vector<8x21xbf16>, vector<21x256xbf16>, vector<8x256xf32> -> vector<8x256xf32>
    %25 = arith.addf %20, %24 : vector<8x256xf32>
    %c5 = arith.constant 5 : index
    %c0_17 = arith.constant 0 : index
    %c0_18 = arith.constant 0 : index
    %26 = vector.load %arg3[%c5, %c0_17, %c0_18] : memref<7x8x21xbf16, #tpu.memory_space<vmem>>, vector<1x8x21xbf16>
    %27 = vector.shape_cast %26 : vector<1x8x21xbf16> to vector<8x21xbf16>
    %28 = vector.extract_strided_slice %1 {offsets = [0, 80], sizes = [21, 256], strides = [1, 1]} : vector<21x352xbf16> to vector<21x256xbf16>
    %cst_19 = arith.constant dense<0.000000e+00> : vector<8x256xf32>
    %29 = tpu.matmul %27, %28, %cst_19 {dimension_numbers = #tpu.dot_dimension_numbers<[1], [0], [0], [1], [0, 0, 1, 1], [], []>} : vector<8x21xbf16>, vector<21x256xbf16>, vector<8x256xf32> -> vector<8x256xf32>
    %30 = arith.addf %25, %29 : vector<8x256xf32>
    %c6 = arith.constant 6 : index
    %c0_20 = arith.constant 0 : index
    %c0_21 = arith.constant 0 : index
    %31 = vector.load %arg3[%c6, %c0_20, %c0_21] : memref<7x8x21xbf16, #tpu.memory_space<vmem>>, vector<1x8x21xbf16>
    %32 = vector.shape_cast %31 : vector<1x8x21xbf16> to vector<8x21xbf16>
    %33 = vector.extract_strided_slice %1 {offsets = [0, 96], sizes = [21, 256], strides = [1, 1]} : vector<21x352xbf16> to vector<21x256xbf16>
    %cst_22 = arith.constant dense<0.000000e+00> : vector<8x256xf32>
    %34 = tpu.matmul %32, %33, %cst_22 {dimension_numbers = #tpu.dot_dimension_numbers<[1], [0], [0], [1], [0, 0, 1, 1], [], []>} : vector<8x21xbf16>, vector<21x256xbf16>, vector<8x256xf32> -> vector<8x256xf32>
    %35 = arith.addf %30, %34 : vector<8x256xf32>
    %cst_23 = arith.constant dense<0.000000e+00> : vector<8xf32>
    %36 = vector.multi_reduction <add>, %35, %cst_23 [1] : vector<8x256xf32> to vector<8xf32>
    %37 = vector.shape_cast %36 : vector<8xf32> to vector<8x1xf32>
    %cst_24 = arith.constant 3.906250e-03 : f32
    %38 = vector.broadcast %cst_24 : f32 to vector<8x1xf32>
    %39 = arith.mulf %37, %38 : vector<8x1xf32>
    %40 = vector.broadcast %39 : vector<8x1xf32> to vector<8x256xf32>
    %41 = arith.subf %35, %40 : vector<8x256xf32>
    %42 = arith.mulf %41, %41 : vector<8x256xf32>
    %cst_25 = arith.constant dense<0.000000e+00> : vector<8xf32>
    %43 = vector.multi_reduction <add>, %42, %cst_25 [1] : vector<8x256xf32> to vector<8xf32>
    %44 = vector.shape_cast %43 : vector<8xf32> to vector<8x1xf32>
    %cst_26 = arith.constant 3.906250e-03 : f32
    %45 = vector.broadcast %cst_26 : f32 to vector<8x1xf32>
    %46 = arith.mulf %44, %45 : vector<8x1xf32>
    %c0_27 = arith.constant 0 : index
    %c0_28 = arith.constant 0 : index
    %47 = vector.load %arg4[%c0_27, %c0_28] : memref<8x1xf32, #tpu.memory_space<vmem>>, vector<8x1xf32>
    %cst_29 = arith.constant 9.99999974E-6 : f32
    %48 = vector.broadcast %cst_29 : f32 to vector<8x1xf32>
    %49 = arith.addf %46, %48 : vector<8x1xf32>
    %50 = math.rsqrt %49 : vector<8x1xf32>
    %51 = arith.mulf %47, %50 : vector<8x1xf32>
    %52 = vector.broadcast %51 : vector<8x1xf32> to vector<8x256xf32>
    %53 = arith.mulf %41, %52 : vector<8x256xf32>
    %c0_30 = arith.constant 0 : index
    %c0_31 = arith.constant 0 : index
    %54 = vector.load %arg5[%c0_30, %c0_31] : memref<8x1xf32, #tpu.memory_space<vmem>>, vector<8x1xf32>
    %55 = vector.broadcast %54 : vector<8x1xf32> to vector<8x256xf32>
    %56 = arith.addf %53, %55 : vector<8x256xf32>
    %cst_32 = arith.constant 0.000000e+00 : f32
    %57 = vector.broadcast %cst_32 : f32 to vector<8x256xf32>
    %58 = arith.maximumf %56, %57 : vector<8x256xf32>
    %59 = arith.truncf %58 : vector<8x256xf32> to vector<8x256xbf16>
    %c0_33 = arith.constant 0 : index
    %c0_34 = arith.constant 0 : index
    %c0_35 = arith.constant 0 : index
    %60 = vector.load %arg6[%c0_33, %c0_34, %c0_35] : memref<1x8x256xbf16, #tpu.memory_space<vmem>>, vector<1x8x256xbf16>
    %61 = vector.shape_cast %60 : vector<1x8x256xbf16> to vector<8x256xbf16>
    %62 = vector.shape_cast %59 : vector<8x256xbf16> to vector<1x8x256xbf16>
    tpu.vector_store %arg6[%c0_33, %c0_34, %c0_35], %62 {strides = array<i32>} : memref<1x8x256xbf16, #tpu.memory_space<vmem>>, vector<1x8x256xbf16>,
    return
  }
  func.func @transform_0(%arg0: i32, %arg1: i32) -> (i32, i32, i32) {
    %c0_i32 = arith.constant 0 : i32
    %c0_i32_0 = arith.constant 0 : i32
    %c0_i32_1 = arith.constant 0 : i32
    return %arg0, %c0_i32, %c0_i32_0 : i32, i32, i32
  }
  func.func @transform_1(%arg0: i32, %arg1: i32) -> (i32, i32, i32) {
    %c0_i32 = arith.constant 0 : i32
    %c0_i32_0 = arith.constant 0 : i32
    %c0_i32_1 = arith.constant 0 : i32
    return %c0_i32, %arg1, %c0_i32_0 : i32, i32, i32
  }
  func.func @transform_2(%arg0: i32, %arg1: i32) -> (i32, i32) {
    %c0_i32 = arith.constant 0 : i32
    %c0_i32_0 = arith.constant 0 : i32
    return %arg1, %c0_i32 : i32, i32
  }
  func.func @transform_3(%arg0: i32, %arg1: i32) -> (i32, i32) {
    %c0_i32 = arith.constant 0 : i32
    %c0_i32_0 = arith.constant 0 : i32
    return %arg1, %c0_i32 : i32, i32
  }
  func.func @transform_4(%arg0: i32, %arg1: i32) -> (i32, i32, i32) {
    %c0_i32 = arith.constant 0 : i32
    %c0_i32_0 = arith.constant 0 : i32
    return %arg0, %arg1, %c0_i32 : i32, i32, i32
  }
}

module attributes {stable_mosaic.version = 11 : i64} {
  func.func @_conv_in_relu_kernel(%arg0: i32, %arg1: i32, %arg2: memref<1x64x72xbf16, #tpu.memory_space<vmem>>, %arg3: memref<2x8x64xbf16, #tpu.memory_space<vmem>>, %arg4: memref<8x1xf32, #tpu.memory_space<vmem>>, %arg5: memref<8x1xf32, #tpu.memory_space<vmem>>, %arg6: memref<1x8x64xbf16, #tpu.memory_space<vmem>>) attributes {dimension_semantics = [#tpu.dimension_semantics<parallel>, #tpu.dimension_semantics<parallel>], iteration_bounds = array<i64: 2, 2>, scalar_prefetch = 0 : i64, scratch_operands = 0 : i64, tpu.core_type = #tpu.core_type<tc>, window_params = [{transform_indices = @transform_0, window_bounds = array<i64: 1, 64, 72>}, {transform_indices = @transform_1, window_bounds = array<i64: 2, 8, 64>}, {transform_indices = @transform_2, window_bounds = array<i64: 8, 1>}, {transform_indices = @transform_3, window_bounds = array<i64: 8, 1>}, {transform_indices = @transform_4, window_bounds = array<i64: 1, 8, 64>}]} {
    %c0 = arith.constant 0 : index
    %c0_0 = arith.constant 0 : index
    %c0_1 = arith.constant 0 : index
    %0 = vector.load %arg2[%c0, %c0_0, %c0_1] : memref<1x64x72xbf16, #tpu.memory_space<vmem>>, vector<1x64x72xbf16>
    %1 = vector.shape_cast %0 : vector<1x64x72xbf16> to vector<64x72xbf16>
    %c0_2 = arith.constant 0 : index
    %c0_3 = arith.constant 0 : index
    %c0_4 = arith.constant 0 : index
    %2 = vector.load %arg3[%c0_2, %c0_3, %c0_4] : memref<2x8x64xbf16, #tpu.memory_space<vmem>>, vector<1x8x64xbf16>
    %3 = vector.shape_cast %2 : vector<1x8x64xbf16> to vector<8x64xbf16>
    %4 = vector.extract_strided_slice %1 {offsets = [0, 0], sizes = [64, 64], strides = [1, 1]} : vector<64x72xbf16> to vector<64x64xbf16>
    %cst = arith.constant dense<0.000000e+00> : vector<8x64xf32>
    %5 = tpu.matmul %3, %4, %cst {dimension_numbers = #tpu.dot_dimension_numbers<[1], [0], [0], [1], [0, 0, 1, 1], [], []>} : vector<8x64xbf16>, vector<64x64xbf16>, vector<8x64xf32> -> vector<8x64xf32>
    %c1 = arith.constant 1 : index
    %c0_5 = arith.constant 0 : index
    %c0_6 = arith.constant 0 : index
    %6 = vector.load %arg3[%c1, %c0_5, %c0_6] : memref<2x8x64xbf16, #tpu.memory_space<vmem>>, vector<1x8x64xbf16>
    %7 = vector.shape_cast %6 : vector<1x8x64xbf16> to vector<8x64xbf16>
    %8 = vector.extract_strided_slice %1 {offsets = [0, 8], sizes = [64, 64], strides = [1, 1]} : vector<64x72xbf16> to vector<64x64xbf16>
    %cst_7 = arith.constant dense<0.000000e+00> : vector<8x64xf32>
    %9 = tpu.matmul %7, %8, %cst_7 {dimension_numbers = #tpu.dot_dimension_numbers<[1], [0], [0], [1], [0, 0, 1, 1], [], []>} : vector<8x64xbf16>, vector<64x64xbf16>, vector<8x64xf32> -> vector<8x64xf32>
    %10 = arith.addf %5, %9 : vector<8x64xf32>
    %cst_8 = arith.constant dense<0.000000e+00> : vector<8xf32>
    %11 = vector.multi_reduction <add>, %10, %cst_8 [1] : vector<8x64xf32> to vector<8xf32>
    %12 = vector.shape_cast %11 : vector<8xf32> to vector<8x1xf32>
    %cst_9 = arith.constant 1.562500e-02 : f32
    %13 = vector.broadcast %cst_9 : f32 to vector<8x1xf32>
    %14 = arith.mulf %12, %13 : vector<8x1xf32>
    %15 = vector.broadcast %14 : vector<8x1xf32> to vector<8x64xf32>
    %16 = arith.subf %10, %15 : vector<8x64xf32>
    %17 = arith.mulf %16, %16 : vector<8x64xf32>
    %cst_10 = arith.constant dense<0.000000e+00> : vector<8xf32>
    %18 = vector.multi_reduction <add>, %17, %cst_10 [1] : vector<8x64xf32> to vector<8xf32>
    %19 = vector.shape_cast %18 : vector<8xf32> to vector<8x1xf32>
    %cst_11 = arith.constant 1.562500e-02 : f32
    %20 = vector.broadcast %cst_11 : f32 to vector<8x1xf32>
    %21 = arith.mulf %19, %20 : vector<8x1xf32>
    %c0_12 = arith.constant 0 : index
    %c0_13 = arith.constant 0 : index
    %22 = vector.load %arg4[%c0_12, %c0_13] : memref<8x1xf32, #tpu.memory_space<vmem>>, vector<8x1xf32>
    %cst_14 = arith.constant 9.99999974E-6 : f32
    %23 = vector.broadcast %cst_14 : f32 to vector<8x1xf32>
    %24 = arith.addf %21, %23 : vector<8x1xf32>
    %25 = math.rsqrt %24 : vector<8x1xf32>
    %26 = arith.mulf %22, %25 : vector<8x1xf32>
    %27 = vector.broadcast %26 : vector<8x1xf32> to vector<8x64xf32>
    %28 = arith.mulf %16, %27 : vector<8x64xf32>
    %c0_15 = arith.constant 0 : index
    %c0_16 = arith.constant 0 : index
    %29 = vector.load %arg5[%c0_15, %c0_16] : memref<8x1xf32, #tpu.memory_space<vmem>>, vector<8x1xf32>
    %30 = vector.broadcast %29 : vector<8x1xf32> to vector<8x64xf32>
    %31 = arith.addf %28, %30 : vector<8x64xf32>
    %cst_17 = arith.constant 0.000000e+00 : f32
    %32 = vector.broadcast %cst_17 : f32 to vector<8x64xf32>
    %33 = arith.maximumf %31, %32 : vector<8x64xf32>
    %34 = arith.truncf %33 : vector<8x64xf32> to vector<8x64xbf16>
    %c0_18 = arith.constant 0 : index
    %c0_19 = arith.constant 0 : index
    %c0_20 = arith.constant 0 : index
    %35 = vector.load %arg6[%c0_18, %c0_19, %c0_20] : memref<1x8x64xbf16, #tpu.memory_space<vmem>>, vector<1x8x64xbf16>
    %36 = vector.shape_cast %35 : vector<1x8x64xbf16> to vector<8x64xbf16>
    %37 = vector.shape_cast %34 : vector<8x64xbf16> to vector<1x8x64xbf16>
    tpu.vector_store %arg6[%c0_18, %c0_19, %c0_20], %37 {strides = array<i32>} : memref<1x8x64xbf16, #tpu.memory_space<vmem>>, vector<1x8x64xbf16>,
    return
  }
  func.func @transform_0(%arg0: i32, %arg1: i32) -> (i32, i32, i32) {
    %c0_i32 = arith.constant 0 : i32
    %c0_i32_0 = arith.constant 0 : i32
    %c0_i32_1 = arith.constant 0 : i32
    return %arg0, %c0_i32, %c0_i32_0 : i32, i32, i32
  }
  func.func @transform_1(%arg0: i32, %arg1: i32) -> (i32, i32, i32) {
    %c0_i32 = arith.constant 0 : i32
    %c0_i32_0 = arith.constant 0 : i32
    %c0_i32_1 = arith.constant 0 : i32
    return %c0_i32, %arg1, %c0_i32_0 : i32, i32, i32
  }
  func.func @transform_2(%arg0: i32, %arg1: i32) -> (i32, i32) {
    %c0_i32 = arith.constant 0 : i32
    %c0_i32_0 = arith.constant 0 : i32
    return %arg1, %c0_i32 : i32, i32
  }
  func.func @transform_3(%arg0: i32, %arg1: i32) -> (i32, i32) {
    %c0_i32 = arith.constant 0 : i32
    %c0_i32_0 = arith.constant 0 : i32
    return %arg1, %c0_i32 : i32, i32
  }
  func.func @transform_4(%arg0: i32, %arg1: i32) -> (i32, i32, i32) {
    %c0_i32 = arith.constant 0 : i32
    %c0_i32_0 = arith.constant 0 : i32
    return %arg0, %arg1, %c0_i32 : i32, i32, i32
  }
}

module attributes {stable_mosaic.version = 11 : i64} {
  func.func @_conv_in_relu_kernel(%arg0: i32, %arg1: i32, %arg2: memref<1x128x20xbf16, #tpu.memory_space<vmem>>, %arg3: memref<2x16x128xbf16, #tpu.memory_space<vmem>>, %arg4: memref<16x1xf32, #tpu.memory_space<vmem>>, %arg5: memref<16x1xf32, #tpu.memory_space<vmem>>, %arg6: memref<1x16x16xf32, #tpu.memory_space<vmem>>) attributes {dimension_semantics = [#tpu.dimension_semantics<parallel>, #tpu.dimension_semantics<parallel>], iteration_bounds = array<i64: 2, 2>, scalar_prefetch = 0 : i64, scratch_operands = 0 : i64, tpu.core_type = #tpu.core_type<tc>, window_params = [{transform_indices = @transform_0, window_bounds = array<i64: 1, 128, 20>}, {transform_indices = @transform_1, window_bounds = array<i64: 2, 16, 128>}, {transform_indices = @transform_2, window_bounds = array<i64: 16, 1>}, {transform_indices = @transform_3, window_bounds = array<i64: 16, 1>}, {transform_indices = @transform_4, window_bounds = array<i64: 1, 16, 16>}]} {
    %c0 = arith.constant 0 : index
    %c0_0 = arith.constant 0 : index
    %c0_1 = arith.constant 0 : index
    %0 = vector.load %arg2[%c0, %c0_0, %c0_1] : memref<1x128x20xbf16, #tpu.memory_space<vmem>>, vector<1x128x20xbf16>
    %1 = vector.shape_cast %0 : vector<1x128x20xbf16> to vector<128x20xbf16>
    %c0_2 = arith.constant 0 : index
    %c0_3 = arith.constant 0 : index
    %c0_4 = arith.constant 0 : index
    %2 = vector.load %arg3[%c0_2, %c0_3, %c0_4] : memref<2x16x128xbf16, #tpu.memory_space<vmem>>, vector<1x16x128xbf16>
    %3 = vector.shape_cast %2 : vector<1x16x128xbf16> to vector<16x128xbf16>
    %4 = vector.extract_strided_slice %1 {offsets = [0, 0], sizes = [128, 16], strides = [1, 1]} : vector<128x20xbf16> to vector<128x16xbf16>
    %cst = arith.constant dense<0.000000e+00> : vector<16x16xf32>
    %5 = tpu.matmul %3, %4, %cst {dimension_numbers = #tpu.dot_dimension_numbers<[1], [0], [0], [1], [0, 0, 1, 1], [], []>} : vector<16x128xbf16>, vector<128x16xbf16>, vector<16x16xf32> -> vector<16x16xf32>
    %c1 = arith.constant 1 : index
    %c0_5 = arith.constant 0 : index
    %c0_6 = arith.constant 0 : index
    %6 = vector.load %arg3[%c1, %c0_5, %c0_6] : memref<2x16x128xbf16, #tpu.memory_space<vmem>>, vector<1x16x128xbf16>
    %7 = vector.shape_cast %6 : vector<1x16x128xbf16> to vector<16x128xbf16>
    %8 = vector.extract_strided_slice %1 {offsets = [0, 4], sizes = [128, 16], strides = [1, 1]} : vector<128x20xbf16> to vector<128x16xbf16>
    %cst_7 = arith.constant dense<0.000000e+00> : vector<16x16xf32>
    %9 = tpu.matmul %7, %8, %cst_7 {dimension_numbers = #tpu.dot_dimension_numbers<[1], [0], [0], [1], [0, 0, 1, 1], [], []>} : vector<16x128xbf16>, vector<128x16xbf16>, vector<16x16xf32> -> vector<16x16xf32>
    %10 = arith.addf %5, %9 : vector<16x16xf32>
    %cst_8 = arith.constant dense<0.000000e+00> : vector<16xf32>
    %11 = vector.multi_reduction <add>, %10, %cst_8 [1] : vector<16x16xf32> to vector<16xf32>
    %12 = vector.shape_cast %11 : vector<16xf32> to vector<16x1xf32>
    %cst_9 = arith.constant 6.250000e-02 : f32
    %13 = vector.broadcast %cst_9 : f32 to vector<16x1xf32>
    %14 = arith.mulf %12, %13 : vector<16x1xf32>
    %15 = vector.broadcast %14 : vector<16x1xf32> to vector<16x16xf32>
    %16 = arith.subf %10, %15 : vector<16x16xf32>
    %17 = arith.mulf %16, %16 : vector<16x16xf32>
    %cst_10 = arith.constant dense<0.000000e+00> : vector<16xf32>
    %18 = vector.multi_reduction <add>, %17, %cst_10 [1] : vector<16x16xf32> to vector<16xf32>
    %19 = vector.shape_cast %18 : vector<16xf32> to vector<16x1xf32>
    %cst_11 = arith.constant 6.250000e-02 : f32
    %20 = vector.broadcast %cst_11 : f32 to vector<16x1xf32>
    %21 = arith.mulf %19, %20 : vector<16x1xf32>
    %c0_12 = arith.constant 0 : index
    %c0_13 = arith.constant 0 : index
    %22 = vector.load %arg4[%c0_12, %c0_13] : memref<16x1xf32, #tpu.memory_space<vmem>>, vector<16x1xf32>
    %cst_14 = arith.constant 9.99999974E-6 : f32
    %23 = vector.broadcast %cst_14 : f32 to vector<16x1xf32>
    %24 = arith.addf %21, %23 : vector<16x1xf32>
    %25 = math.rsqrt %24 : vector<16x1xf32>
    %26 = arith.mulf %22, %25 : vector<16x1xf32>
    %27 = vector.broadcast %26 : vector<16x1xf32> to vector<16x16xf32>
    %28 = arith.mulf %16, %27 : vector<16x16xf32>
    %c0_15 = arith.constant 0 : index
    %c0_16 = arith.constant 0 : index
    %29 = vector.load %arg5[%c0_15, %c0_16] : memref<16x1xf32, #tpu.memory_space<vmem>>, vector<16x1xf32>
    %30 = vector.broadcast %29 : vector<16x1xf32> to vector<16x16xf32>
    %31 = arith.addf %28, %30 : vector<16x16xf32>
    %cst_17 = arith.constant 0.000000e+00 : f32
    %32 = vector.broadcast %cst_17 : f32 to vector<16x16xf32>
    %33 = arith.maximumf %31, %32 : vector<16x16xf32>
    %c0_18 = arith.constant 0 : index
    %c0_19 = arith.constant 0 : index
    %c0_20 = arith.constant 0 : index
    %34 = vector.load %arg6[%c0_18, %c0_19, %c0_20] : memref<1x16x16xf32, #tpu.memory_space<vmem>>, vector<1x16x16xf32>
    %35 = vector.shape_cast %34 : vector<1x16x16xf32> to vector<16x16xf32>
    %36 = vector.shape_cast %33 : vector<16x16xf32> to vector<1x16x16xf32>
    tpu.vector_store %arg6[%c0_18, %c0_19, %c0_20], %36 {strides = array<i32>} : memref<1x16x16xf32, #tpu.memory_space<vmem>>, vector<1x16x16xf32>,
    return
  }
  func.func @transform_0(%arg0: i32, %arg1: i32) -> (i32, i32, i32) {
    %c0_i32 = arith.constant 0 : i32
    %c0_i32_0 = arith.constant 0 : i32
    %c0_i32_1 = arith.constant 0 : i32
    return %arg0, %c0_i32, %c0_i32_0 : i32, i32, i32
  }
  func.func @transform_1(%arg0: i32, %arg1: i32) -> (i32, i32, i32) {
    %c0_i32 = arith.constant 0 : i32
    %c0_i32_0 = arith.constant 0 : i32
    %c0_i32_1 = arith.constant 0 : i32
    return %c0_i32, %arg1, %c0_i32_0 : i32, i32, i32
  }
  func.func @transform_2(%arg0: i32, %arg1: i32) -> (i32, i32) {
    %c0_i32 = arith.constant 0 : i32
    %c0_i32_0 = arith.constant 0 : i32
    return %arg1, %c0_i32 : i32, i32
  }
  func.func @transform_3(%arg0: i32, %arg1: i32) -> (i32, i32) {
    %c0_i32 = arith.constant 0 : i32
    %c0_i32_0 = arith.constant 0 : i32
    return %arg1, %c0_i32 : i32, i32
  }
  func.func @transform_4(%arg0: i32, %arg1: i32) -> (i32, i32, i32) {
    %c0_i32 = arith.constant 0 : i32
    %c0_i32_0 = arith.constant 0 : i32
    return %arg0, %arg1, %c0_i32 : i32, i32, i32
  }
}

</mosaic_0001>

<bundles_post_ra>
// kernel: down_conv_forward.3
= control target key start
LH: loop header
LB: loop body
LE: loop exit
PB: predicated region body
PF: predicated region fallthrough
CT: control target
= control target key end

     0   :  { %s1100_s15 = smov 0   ;;  %s1102_s16 = smov 0   ;;  %s1220_s0 = inlined_call_operand.vmem [shape: bf16[2,21,352], index: 0, kind: input, shape index: {}]   ;;  %s1221_s1 = inlined_call_operand.vmem [shape: bf16[7,8,21], index: 1, kind: input, shape index: {}]   ;;  %s1222_s2 = inlined_call_operand.vmem [shape: f32[8,1], index: 2, kind: input, shape index: {}]   ;;  %s1223_s3 = inlined_call_operand.vmem [shape: f32[8,1], index: 3, kind: input, shape index: {}]   ;;  %s1224_s4 = inlined_call_operand.vmem [shape: bf16[2,8,256], index: 4, kind: output, shape index: {}]  }
   0x1   :  { %s1104_s17 = smov 0  }
   0x2 LB: > { %s26_s18 = sadd.s32 1, %s1061_s16  ;;  %p971_p0 = scmp.ge.s32.totalorder %s1065_s17, 1  ;;  %s1065_s17 = sphi %s1104_s17, %s14_s17   ;;  %s1061_s16 = sphi %s1102_s16, %s1226_s16   ;;  %s1057_s15 = sphi %s1100_s15, %s1225_s15  }
   0x3   : > { %p28_p1 = scmp.ge.s32.totalorder %s26_s18, 2  ;;  %p203_p2 = scmp.lt.s32.totalorder %s1065_s17, 3 }
   0x5   : > { %s1228_s18 = smov (%p28_p1, %s26_s18), 0  ;;  %p204_p3 = pnand %p971_p0, %p203_p2 }
   0x6   : > { %p245_p4 = scmp.lt.s32.totalorder (!%p204_p3), %s1057_s15, 1  ;;  %s1067_s23 = smov (!%p204_p3), 112  }
   0x7   : > { %207 = sbr.rel (%p204_p3) target bundleno = 843 (0x34b), region = 36  ;;  %s1070_s24 = smov (!%p204_p3), 96  }
   0x8   : > { %s1071_s27 = smov (!%p204_p3), 80   ;;  %s1072_s28 = smov (!%p204_p3), 64  }
   0x9   : > { %s1073_s29 = smov (!%p204_p3), 48   ;;  %s1074_s30 = smov (!%p204_p3), 32  }
   0xc   : > { %s1230_s15 = smov (!%p245_p4, %s1057_s15), 1  ;;  %vm325_vm0 = vcmask 1041408   ;;  %vm326_vm1 = vcmask 1042432   ;;  %v1068_v5 = vmov 65535   ;;  %v1069_v10 = vmov 0  }
   0xd   : > { %s999_s19 = smul.u32 36, %s1230_s15  ;;  %v327_v6 = vsel %vm325_vm0, 4294967295, %v1068_v5  ;;  %367 = vmatprep.mubr.bf16.mxu0 %v1069_v10  ;;  %419 = vmatprep.mubr.bf16.mxu1 %v1069_v10  ;;  %vm321_vm2 = vcmask 171008   ;;  %v278_v13 = vld [vmem:[%s1221_s1] sm:$0xf]  ;;  %vm314_vm3 = vcmask 916480  }
   0xe   : > { %v1124_v9 = vsel %vm326_vm1, %v327_v6, 0  ;;  %1032 = vset.pattern.permute.xlu0 %v1069_v10  ;;  %1033 = vset.pattern.permute.xlu1 %v1069_v10  ;;  %vm442_vm4 = vcmask 785408   ;;  %v975_v29 = vld [vmem:[%s1221_s1 + $0x4] sm:$0xf]  ;;  %vm515_vm5 = vcmask 654336   ;;  %vm588_vm6 = vcmask 523264  }
   0xf   : > { %s249_s22 = scalar_lea.vmem %s1220_s0, %s999_s19  ;;  %v984_v43 = vld [vmem:[%s1221_s1 + $0x8] sm:$0xf]  ;;  %v986_v60 = vld [vmem:[%s1221_s1 + $0xc] sm:$0xf]  ;;  %vm661_vm7 = vcmask 392192   ;;  %vm734_vm8 = vcmask 261120  }
  0x10   : > { %v276_v0 = vld [vmem:[%s249_s22 + $0x18] sm:$0x77]  ;;  %v1036_v3 = vld [vmem:[%s249_s22 + $0x20] ss:$0 sps:$4 sm:$0x77]   ;;  %s997_s25 = sshll.u32 %s1230_s15, 3 }
  0x11   : > { %v980_v1 = vcombine.high %v276_v0, %v276_v0  ;;  %v979_v2 = vcombine.low %v276_v0, %v276_v0  ;;  %v1037_v4 = vld [vmem:[%s249_s22 + $0x4] ss:$12 sps:$4 sm:$0xff]   ;;  %v1039_v7 = vld [vmem:[%s249_s22 + $0x8] ss:$12 sps:$4 sm:$0xff]   ;;  %v1040_v8 = vld [vmem:[%s249_s22] ss:$12 sps:$4 sm:$0xff]  }
  0x12   : > { %v988_v5 = vld [vmem:[%s1221_s1 + $0x10] sm:$0xf] }
  0x13   : > { %310 = vrot.lane.b32.xlu0 %v980_v1, %s1067_s23  ;;  %308 = vrot.lane.b32.xlu1 %v979_v2, %s1067_s23  ;;  %v385_v11 = vand.u32 %v980_v1, %v1124_v9  ;;  %v382_v12 = vand.u32 %v979_v2, %v1124_v9 }
  0x15   : > { %399 = vmatprep.subr.bf16.mxu1 %v385_v11 }
  0x16   : > { %400 = vmatpush1.bf16.msra.mxu1 %v382_v12 }
  0x17   : > { %312 = vrot.lane.b32.xlu0 %v1036_v3, %s1067_s23  ;;  %304 = vrot.lane.b32.xlu1 %v1037_v4, %s1067_s23 }
  0x18   : > { %401 = vmatprep.subr.bf16.mxu1 %v1037_v4 }
  0x1a   : > { %402 = vmatpush1.bf16.msra.mxu1 %v1040_v8 }
  0x1b   : > { %306 = vrot.lane.b32.xlu0 %v1039_v7, %s1067_s23  ;;  %302 = vrot.lane.b32.xlu1 %v1040_v8, %s1067_s23 }
  0x1d   : > { %983 = vmatmul.mubr.msk.bf16.vlgmr.msra.gmra.mxu1 %vm321_vm2, %v278_v13 }
  0x1e   : > { %563 = vmatprep.mubr.bf16.mxu1 %v1069_v10 }
  0x1f   : > { %438 = vrot.lane.b32.xlu0 %v980_v1, %s1070_s24  ;;  %440 = vrot.lane.b32.xlu1 %v1036_v3, %s1070_s24 }
  0x23   : > { %436 = vrot.lane.b32.xlu0 %v979_v2, %s1070_s24  ;;  %432 = vrot.lane.b32.xlu1 %v1037_v4, %s1070_s24 }
  0x27   : > { %434 = vrot.lane.b32.xlu0 %v1039_v7, %s1070_s24  ;;  %511 = vrot.lane.b32.xlu1 %v980_v1, %s1071_s27 }
  0x2b   : > { %513 = vrot.lane.b32.xlu0 %v1036_v3, %s1071_s27  ;;  %430 = vrot.lane.b32.xlu1 %v1040_v8, %s1070_s24 }
  0x2f   : > { %509 = vrot.lane.b32.xlu0 %v979_v2, %s1071_s27  ;;  %584 = vrot.lane.b32.xlu1 %v980_v1, %s1072_s28 }
  0x33   : > { %586 = vrot.lane.b32.xlu0 %v1036_v3, %s1072_s28  ;;  %582 = vrot.lane.b32.xlu1 %v979_v2, %s1072_s28 }
  0x37   : > { %505 = vrot.lane.b32.xlu0 %v1037_v4, %s1071_s27  ;;  %507 = vrot.lane.b32.xlu1 %v1039_v7, %s1071_s27 }
  0x3b   : > { %503 = vrot.lane.b32.xlu0 %v1040_v8, %s1071_s27  ;;  %578 = vrot.lane.b32.xlu1 %v1037_v4, %s1072_s28 }
  0x3f   : > { %580 = vrot.lane.b32.xlu0 %v1039_v7, %s1072_s28  ;;  %657 = vrot.lane.b32.xlu1 %v980_v1, %s1073_s29 }
  0x43   : > { %659 = vrot.lane.b32.xlu0 %v1036_v3, %s1073_s29  ;;  %576 = vrot.lane.b32.xlu1 %v1040_v8, %s1072_s28  ;;  %s270_s28 = scalar_lea.vmem %s1224_s4, %s997_s25 }
  0x47   : > { %655 = vrot.lane.b32.xlu0 %v979_v2, %s1073_s29  ;;  %730 = vrot.lane.b32.xlu1 %v980_v1, %s1074_s30 }
  0x4b   : > { %732 = vrot.lane.b32.xlu0 %v1036_v3, %s1074_s30  ;;  %728 = vrot.lane.b32.xlu1 %v979_v2, %s1074_s30 }
  0x4f   : > { %651 = vrot.lane.b32.xlu0 %v1037_v4, %s1073_s29  ;;  %653 = vrot.lane.b32.xlu1 %v1039_v7, %s1073_s29 }
  0x53   : > { %649 = vrot.lane.b32.xlu0 %v1040_v8, %s1073_s29  ;;  %724 = vrot.lane.b32.xlu1 %v1037_v4, %s1074_s30 }
  0x57   : > { %726 = vrot.lane.b32.xlu0 %v1039_v7, %s1074_s30  ;;  %722 = vrot.lane.b32.xlu1 %v1040_v8, %s1074_s30 }
  0x85   : > { %v311_v14 = vpop.permute.xlu0 %310  ;;  %v309_v15 = vpop.permute.xlu1 %308 }
  0x86   : > { %v317_v16 = vsel %vm314_vm3, %v309_v15, %v311_v14 }
  0x87   : > { %v330_v21 = vand.u32 %v1124_v9, %v317_v16 }
  0x89   : > { %v313_v17 = vpop.permute.xlu0 %312  ;;  %v305_v18 = vpop.permute.xlu1 %304 }
  0x8a   : > { %v318_v19 = vsel %vm314_vm3, %v311_v14, %v313_v17 }
  0x8b   : > { %v333_v20 = vand.u32 %v1124_v9, %v318_v19 }
  0x8d   : > { %347 = vmatprep.subr.bf16.mxu0 %v333_v20  ;;  %v307_v22 = vpop.permute.xlu0 %306  ;;  %v303_v23 = vpop.permute.xlu1 %302 }
  0x8e   : > { %348 = vmatpush1.bf16.msra.mxu0 %v330_v21  ;;  %v316_v24 = vsel %vm314_vm3, %v305_v18, %v307_v22  ;;  %v315_v27 = vsel %vm314_vm3, %v303_v23, %v305_v18  ;;  %v990_v23 = vld [vmem:[%s1221_s1 + $0x14] sm:$0xf] }
  0x8f   : > { %349 = vmatprep.subr.bf16.mxu0 %v316_v24 }
  0x91   : > { %v439_v25 = vpop.permute.xlu0 %438  ;;  %v441_v26 = vpop.permute.xlu1 %440 }
  0x92   : > { %v446_v28 = vsel %vm442_vm4, %v439_v25, %v441_v26  ;;  %350 = vmatpush1.bf16.msra.mxu0 %v315_v27  ;;  %v992_v27 = vld [vmem:[%s1221_s1 + $0x18] sm:$0xf] }
  0x93   : > { %v456_v30 = vand.u32 %v446_v28, %v1124_v9 }
  0x95   : > { %v437_v31 = vpop.permute.xlu0 %436  ;;  %470 = vmatprep.subr.bf16.mxu0 %v456_v30  ;;  %v433_v32 = vpop.permute.xlu1 %432  ;;  %982 = vmatmul.mubr.msk.bf16.vlgmr.msra.gmra.mxu0 %vm321_vm2, %v975_v29 }
  0x96   : > { %v445_v33 = vsel %vm442_vm4, %v437_v31, %v439_v25  ;;  %490 = vmatprep.mubr.bf16.mxu0 %v1069_v10 }
  0x97   : > { %v453_v34 = vand.u32 %v445_v33, %v1124_v9 }
  0x99   : > { %v435_v35 = vpop.permute.xlu0 %434  ;;  %471 = vmatpush1.bf16.msra.mxu0 %v453_v34  ;;  %v512_v36 = vpop.permute.xlu1 %511 }
  0x9a   : > { %v444_v37 = vsel %vm442_vm4, %v433_v32, %v435_v35 }
  0x9b   : > { %472 = vmatprep.subr.bf16.mxu0 %v444_v37 }
  0x9d   : > { %v514_v38 = vpop.permute.xlu0 %513  ;;  %v431_v39 = vpop.permute.xlu1 %430 }
  0x9e   : > { %v519_v40 = vsel %vm515_vm5, %v512_v36, %v514_v38  ;;  %v443_v41 = vsel %vm442_vm4, %v431_v39, %v433_v32 }
  0x9f   : > { %v529_v42 = vand.u32 %v519_v40, %v1124_v9  ;;  %473 = vmatpush1.bf16.msra.mxu0 %v443_v41 }
  0xa1   : > { %v510_v44 = vpop.permute.xlu0 %509  ;;  %v585_v45 = vpop.permute.xlu1 %584  ;;  %543 = vmatprep.subr.bf16.mxu1 %v529_v42 }
  0xa2   : > { %v518_v46 = vsel %vm515_vm5, %v510_v44, %v512_v36  ;;  %985 = vmatmul.mubr.msk.bf16.vlgmr.msra.gmra.mxu0 %vm321_vm2, %v984_v43 }
  0xa3   : > { %v526_v47 = vand.u32 %v518_v46, %v1124_v9  ;;  %636 = vmatprep.mubr.bf16.mxu0 %v1069_v10 }
  0xa5   : > { %v587_v48 = vpop.permute.xlu0 %586  ;;  %v583_v49 = vpop.permute.xlu1 %582  ;;  %544 = vmatpush1.bf16.msra.mxu1 %v526_v47 }
  0xa6   : > { %v592_v50 = vsel %vm588_vm6, %v585_v45, %v587_v48  ;;  %v591_v51 = vsel %vm588_vm6, %v583_v49, %v585_v45 }
  0xa7   : > { %v602_v52 = vand.u32 %v592_v50, %v1124_v9  ;;  %v599_v53 = vand.u32 %v591_v51, %v1124_v9 }
  0xa9   : > { %v506_v54 = vpop.permute.xlu0 %505  ;;  %616 = vmatprep.subr.bf16.mxu0 %v602_v52  ;;  %v508_v55 = vpop.permute.xlu1 %507 }
  0xaa   : > { %617 = vmatpush1.bf16.msra.mxu0 %v599_v53  ;;  %v517_v56 = vsel %vm515_vm5, %v506_v54, %v508_v55 }
  0xab   : > { %545 = vmatprep.subr.bf16.mxu1 %v517_v56 }
  0xad   : > { %v504_v57 = vpop.permute.xlu0 %503  ;;  %v579_v58 = vpop.permute.xlu1 %578 }
  0xae   : > { %v516_v59 = vsel %vm515_vm5, %v504_v57, %v506_v54 }
  0xaf   : > { %546 = vmatpush1.bf16.msra.mxu1 %v516_v59 }
  0xb1   : > { %v581_v61 = vpop.permute.xlu0 %580  ;;  %v658_v62 = vpop.permute.xlu1 %657 }
  0xb2   : > { %v590_v63 = vsel %vm588_vm6, %v579_v58, %v581_v61  ;;  %987 = vmatmul.mubr.msk.bf16.vlgmr.msra.gmra.mxu1 %vm321_vm2, %v986_v60 }
  0xb3   : > { %618 = vmatprep.subr.bf16.mxu0 %v590_v63  ;;  %709 = vmatprep.mubr.bf16.mxu1 %v1069_v10 }
  0xb5   : > { %v660_v0 = vpop.permute.xlu0 %659  ;;  %v577_v1 = vpop.permute.xlu1 %576 }
  0xb6   : > { %v665_v2 = vsel %vm661_vm7, %v658_v62, %v660_v0  ;;  %v589_v3 = vsel %vm588_vm6, %v577_v1, %v579_v58 }
  0xb7   : > { %v675_v4 = vand.u32 %v665_v2, %v1124_v9  ;;  %619 = vmatpush1.bf16.msra.mxu0 %v589_v3 }
  0xb9   : > { %v656_v6 = vpop.permute.xlu0 %655  ;;  %v731_v7 = vpop.permute.xlu1 %730  ;;  %689 = vmatprep.subr.bf16.mxu1 %v675_v4 }
  0xba   : > { %v664_v8 = vsel %vm661_vm7, %v656_v6, %v658_v62  ;;  %989 = vmatmul.mubr.msk.bf16.vlgmr.msra.gmra.mxu0 %vm321_vm2, %v988_v5 }
  0xbb   : > { %v672_v11 = vand.u32 %v664_v8, %v1124_v9  ;;  %782 = vmatprep.mubr.bf16.mxu0 %v1069_v10 }
  0xbd   : > { %v733_v12 = vpop.permute.xlu0 %732  ;;  %v729_v13 = vpop.permute.xlu1 %728  ;;  %690 = vmatpush1.bf16.msra.mxu1 %v672_v11 }
  0xbe   : > { %v738_v14 = vsel %vm734_vm8, %v731_v7, %v733_v12  ;;  %v737_v15 = vsel %vm734_vm8, %v729_v13, %v731_v7 }
  0xbf   : > { %v748_v16 = vand.u32 %v738_v14, %v1124_v9  ;;  %v745_v17 = vand.u32 %v737_v15, %v1124_v9  ;;  %v816_v14 = vld [vmem:[%s1223_s3] sm:$0xff] }
  0xc1   : > { %v652_v18 = vpop.permute.xlu0 %651  ;;  %762 = vmatprep.subr.bf16.mxu0 %v748_v16  ;;  %v654_v19 = vpop.permute.xlu1 %653 }
  0xc2   : > { %763 = vmatpush1.bf16.msra.mxu0 %v745_v17  ;;  %v663_v20 = vsel %vm661_vm7, %v652_v18, %v654_v19 }
  0xc3   : > { %691 = vmatprep.subr.bf16.mxu1 %v663_v20 }
  0xc5   : > { %v650_v21 = vpop.permute.xlu0 %649  ;;  %v725_v10 = vpop.permute.xlu1 %724 }
  0xc6   : > { %v662_v22 = vsel %vm661_vm7, %v650_v21, %v652_v18  ;;  %v805_v18 = vld [vmem:[%s1222_s2] sm:$0xff] }
  0xc7   : > { %692 = vmatpush1.bf16.msra.mxu1 %v662_v22 }
  0xc9   : > { %v727_v24 = vpop.permute.xlu0 %726  ;;  %v723_v25 = vpop.permute.xlu1 %722 }
  0xca   : > { %v735_v9 = vsel %vm734_vm8, %v723_v25, %v725_v10  ;;  %991 = vmatmul.mubr.msk.bf16.vlgmr.msra.gmra.mxu1 %vm321_vm2, %v990_v23  ;;  %v736_v26 = vsel %vm734_vm8, %v725_v10, %v727_v24 }
  0xcb   : > { %764 = vmatprep.subr.bf16.mxu0 %v736_v26 }
  0xcc   : > { %765 = vmatpush1.bf16.msra.mxu0 %v735_v9 }
  0xcf   : > { %993 = vmatmul.mubr.msk.bf16.vlgmr.msra.gmra.mxu0 %vm321_vm2, %v992_v27 }
  0xdd   : > { %v421_v28 = vpop.f32.mrf.mxu1 }
  0xdf   : > { %v423_v29 = vpop.f32.mrf.mxu1 }
  0xe1   : > { %v425_v30 = vpop.f32.mrf.mxu1 }
  0xe3   : > { %v426_v31 = vpop.f32.mrf.mxu1 }
 0x155   : > { %v369_v32 = vpop.f32.mrf.mxu0 }
 0x156   : > { %v422_v48 = vadd.f32 %v421_v28, %v369_v32 }
 0x157   : > { %v371_v33 = vpop.f32.mrf.mxu0 }
 0x158   : > { %v424_v49 = vadd.f32 %v423_v29, %v371_v33 }
 0x159   : > { %v373_v34 = vpop.f32.mrf.mxu0 }
 0x15b   : > { %v374_v35 = vpop.f32.mrf.mxu0 }
 0x162   : > { %v492_v36 = vpop.f32.mrf.mxu0 }
 0x163   : > { %v499_v50 = vadd.f32 %v492_v36, %v422_v48 }
 0x164   : > { %v494_v37 = vpop.f32.mrf.mxu0 }
 0x165   : > { %v500_v51 = vadd.f32 %v494_v37, %v424_v49 }
 0x166   : > { %v496_v38 = vpop.f32.mrf.mxu0 }
 0x168   : > { %v497_v39 = vpop.f32.mrf.mxu0 }
 0x172   : > { %v565_v40 = vpop.f32.mrf.mxu1 }
 0x173   : > { %v572_v52 = vadd.f32 %v565_v40, %v499_v50 }
 0x174   : > { %v567_v41 = vpop.f32.mrf.mxu1 }
 0x175   : > { %v573_v53 = vadd.f32 %v567_v41, %v500_v51 }
 0x176   : > { %v569_v42 = vpop.f32.mrf.mxu1 }
 0x178   : > { %v570_v43 = vpop.f32.mrf.mxu1 }
 0x17a   : > { %v638_v44 = vpop.f32.mrf.mxu0 }
 0x17b   : > { %v645_v56 = vadd.f32 %v638_v44, %v572_v52 }
 0x17c   : > { %v640_v45 = vpop.f32.mrf.mxu0 }
 0x17d   : > { %v646_v57 = vadd.f32 %v640_v45, %v573_v53 }
 0x17e   : > { %v642_v46 = vpop.f32.mrf.mxu0 }
 0x180   : > { %v643_v47 = vpop.f32.mrf.mxu0 }
 0x18a   : > { %v711_v54 = vpop.f32.mrf.mxu1 }
 0x18b   : > { %v718_v60 = vadd.f32 %v711_v54, %v645_v56 }
 0x18c   : > { %v713_v55 = vpop.f32.mrf.mxu1 }
 0x18d   : > { %v719_v61 = vadd.f32 %v713_v55, %v646_v57 }
 0x18e   : > { %v715_v58 = vpop.f32.mrf.mxu1 }
 0x18f   : > { %v784_v59 = vpop.f32.mrf.mxu0 }
 0x190   : > { %v716_v62 = vpop.f32.mrf.mxu1  ;;  %v791_v0 = vadd.f32 %v784_v59, %v718_v60 }
 0x191   : > { %v786_v63 = vpop.f32.mrf.mxu0 }
 0x192   : > { %v792_v1 = vadd.f32 %v786_v63, %v719_v61 }
 0x193   : > { %v788_v2 = vpop.f32.mrf.mxu0 }
 0x194   : > { %v793_v3 = vadd.f32 %v792_v1, %v791_v0 }
 0x195   : > { %v789_v4 = vpop.f32.mrf.mxu0 }
 0x196   : > { %794 = vadd.xlane.f32.xlu0 %v793_v3 }
 0x21f   : > { %v795_v5 = vpop.xlane.xlu0 %794 }
 0x220   : > { %v796_v6 = vmul.f32 0.00390625, %v795_v5 }
 0x222   : > { %v797_v7 = vsub.f32 %v791_v0, %v796_v6  ;;  %v798_v8 = vsub.f32 %v792_v1, %v796_v6 }
 0x224   : > { %v799_v11 = vmul.f32 %v797_v7, %v797_v7  ;;  %v800_v12 = vmul.f32 %v798_v8, %v798_v8 }
 0x226   : > { %v801_v13 = vadd.f32 %v800_v12, %v799_v11 }
 0x228   : > { %802 = vadd.xlane.f32.xlu1 %v801_v13 }
 0x239   : > { %819 = vperm.xlu1 %1033, %v816_v14  }
 0x2b1   : > { %v803_v15 = vpop.xlane.xlu1 %802 }
 0x2b2   : > { %v804_v16 = vmul.f32 0.00390625, %v803_v15 }
 0x2b4   : > { %v806_v17 = vadd.f32 1e-05, %v804_v16 }
 0x2b5   : > { %v820_v10 = vpop.permute.xlu1 %819 }
 0x2b6   : > { %1041 = vrsqrt.f32 %v806_v17 }
 0x2c3   : > { %v1042_v19 = vpop.eup %1041 }
 0x2c4   : > { %v808_v20 = vmul.f32 %v1042_v19, %v805_v18 }
 0x2c6   : > { %811 = vperm.xlu0 %1032, %v808_v20  }
 0x341   : > { %v812_v21 = vpop.permute.xlu0 %811 }
 0x342   : > { %v814_v22 = vmul.f32 %v812_v21, %v797_v7  ;;  %v815_v23 = vmul.f32 %v812_v21, %v798_v8 }
 0x344   : > { %v822_v24 = vadd.f32 %v820_v10, %v814_v22  ;;  %v823_v25 = vadd.f32 %v820_v10, %v815_v23 }
 0x346   : > { %v824_v9 = vmax.f32 %v822_v24, 0.0  ;;  %v825_v26 = vmax.f32 %v823_v25, 0.0 }
 0x348   : > { %v998_v27 = vpack.c.bf16 %v825_v26, %v824_v9 }
 0x34a   : > { %834 = vst [vmem:[%s270_s28] sm:$0xff] %v998_v27 }
 0x34b PF: > { %s14_s17 = sadd.s32 1, %s1065_s17   ;;  %s1225_s15 = smov %s1061_s16 }
 0x34c   : > { %p11_p5 = scmp.ge.s32.totalorder %s14_s17, 4   ;;  %s1226_s16 = smov %s1228_s18 }
 0x34e   :  { %13 = sbr.rel (!%p11_p5) target bundleno = 2 (0x2), region = 81 }

// kernel: down_conv_forward.4
= control target key start
LH: loop header
LB: loop body
LE: loop exit
PB: predicated region body
PF: predicated region fallthrough
CT: control target
= control target key end

     0   :  { %s818_s15 = smov 0   ;;  %s820_s16 = smov 0   ;;  %s923_s0 = inlined_call_operand.vmem [shape: bf16[2,64,72], index: 0, kind: input, shape index: {}]   ;;  %s924_s1 = inlined_call_operand.vmem [shape: bf16[2,16,64], index: 1, kind: input, shape index: {}]   ;;  %s925_s2 = inlined_call_operand.vmem [shape: f32[16,1], index: 2, kind: input, shape index: {}]   ;;  %s926_s3 = inlined_call_operand.vmem [shape: f32[16,1], index: 3, kind: input, shape index: {}]   ;;  %s927_s4 = inlined_call_operand.vmem [shape: bf16[2,16,64], index: 4, kind: output, shape index: {}]  }
   0x1   :  { %s822_s17 = smov 0   ;;  %s824_s18 = smov 0  }
   0x2   :  { %s826_s19 = smov 0   ;;  %s828_s20 = smov 0  }
   0x3   :  { %s830_s21 = smov 0  }
   0x4 LB: > { %s23_s22 = sadd.s32 1, %s779_s19  ;;  %s26_s23 = sadd.s32 1, %s783_s20  ;;  %s787_s21 = sphi %s830_s21, %s14_s21   ;;  %s783_s20 = sphi %s828_s20, %s933_s20   ;;  %s779_s19 = sphi %s826_s19, %s932_s19   ;;  %s775_s18 = sphi %s824_s18, %s931_s18   ;;  %s771_s17 = sphi %s822_s17, %s930_s17   ;;  %s767_s16 = sphi %s820_s16, %s929_s16   ;;  %s763_s15 = sphi %s818_s15, %s928_s15  }
   0x5   : > { %p24_p0 = scmp.ge.s32.totalorder %s23_s22, 2  ;;  %s59_s24 = sadd.s32 1, %s767_s16 }
   0x6   : > { %p66_p1 = scmp.ne.s32.totalorder %s767_s16, %s763_s15  ;;  %p67_p2 = scmp.eq.s32.totalorder %s787_s21, 0 }
   0x7   : > { %s935_s22 = smov (%p24_p0, %s23_s22), 0  ;;  %s937_s23 = smov (!%p24_p0, %s26_s23), %s783_s20 }
   0x8   : > { %s56_s25 = ssub.s32 %s779_s19, %s935_s22  ;;  %p68_p3 = por %p67_p2, %p66_p1 }
   0x9   : > { %p28_p4 = scmp.ge.s32.totalorder %s937_s23, 2  ;;  %p57_p5 = scmp.eq.s32.totalorder %s56_s25, 0 }
   0xa   : > { %p610_p6 = scmp.ge.s32.totalorder %s787_s21, 4 }
   0xb   : > { %s939_s23 = smov (%p28_p4, %s937_s23), 0 }
   0xc   : > { %s867_s26 = scalar_select %p57_p5, %s767_s16, %s59_s24  }
   0xd   : > { %172 = sbr.rel (%p610_p6) target bundleno = 23 (0x17), region = 16 }
  0x12   : > { %183 = sbr.rel (!%p68_p3) target bundleno = 23 (0x17), region = 24  ;;  %s185_s27 = sand.u32 (%p68_p3), 1, %s767_s16  }
  0x13   : > { %s612_s28 = sshll.u32 (%p68_p3), %s779_s19, 2  ;;  %s611_s29 = sshll.u32 (%p68_p3), %s185_s27, 3 }
  0x14   : > { %s189_s6 = scalar_lea.vmem (%p68_p3), %s924_s1, %s612_s28  ;;  %s187_s7 = scalar_lea.vmem (%p68_p3), [#allocation2], %s611_s29 }
  0x15   : > { %v206_v0 = vld [vmem:[%s189_s6] sm:$0xf] (%p68_p3)  ;;  %v208_v1 = vld [vmem:[%s189_s6 + $0x8] sm:$0xf] (%p68_p3) }
  0x16   : > { %207 = vst [vmem:[%s187_s7] sm:$0xf] (%p68_p3), %v206_v0  ;;  %209 = vst [vmem:[%s187_s7 + $0x4] sm:$0xf] (%p68_p3), %v208_v1 }
  0x17 PF: > { %p613_p7 = scmp.ge.s32.totalorder %s787_s21, 1  ;;  %p250_p8 = scmp.lt.s32.totalorder %s787_s21, 5 }
  0x19   : > { %p251_p9 = pnand %p613_p7, %p250_p8 }
  0x1a   : > { %p298_p10 = scmp.lt.s32.totalorder (!%p251_p9), %s775_s18, 1  ;;  %s791_s12 = smov (!%p251_p9), 120  }
  0x1b   : > { %254 = sbr.rel (%p251_p9) target bundleno = 798 (0x31e), region = 73  ;;  %s257_s13 = sand.u32 (!%p251_p9), 1, %s763_s15  }
  0x1c   : > { %s614_s14 = sshll.u32 (!%p251_p9), %s257_s13, 3  ;;  %p303_p11 = scmp.lt.s32.totalorder (!%p251_p9), %s771_s17, 1 }
  0x1d   : > { %s259_s24 = scalar_lea.vmem (!%p251_p9), [#allocation2], %s614_s14 }
  0x20   : > { %v789_v2 = vmov 0.0   ;;  %s941_s18 = smov (!%p298_p10, %s775_s18), 1  ;;  %vm790_vm0 = vmmov 0   ;;  %v328_v7 = vld [vmem:[%s259_s24] sm:$0xf]  ;;  %vm363_vm1 = vcmask 523264  }
  0x21   : > { %653 = vmatprep.subr.bf16.mxu1 %v789_v2  ;;  %641 = vmatprep.subr.bf16.mxu0 %v789_v2  ;;  %s630_s8 = sshll.u32 %s941_s18, 5  ;;  %v621_v12 = vld [vmem:[%s259_s24 + $0x4] sm:$0xf]  ;;  %v792_v28 = vmov 0   ;;  %s943_s17 = smov (!%p303_p11, %s771_s17), 1  ;;  %vm483_vm2 = vcmask 519168  }
  0x22   : > { %661 = vmatprep.mubr.msk.bf16.mxu1 %vm790_vm0, %v789_v2  ;;  %649 = vmatprep.mubr.msk.bf16.mxu0 %vm790_vm0, %v789_v2  ;;  %s302_s11 = scalar_lea.vmem %s923_s0, %s630_s8  ;;  %s617_s15 = sshll.u32 %s943_s17, 3 }
  0x23   : > { %v727_v3 = vld [vmem:[%s302_s11 + $0x18] sm:$0xff]   ;;  %v728_v4 = vld [vmem:[%s302_s11 + $0x10] sm:$0xff]   ;;  %v729_v5 = vld [vmem:[%s302_s11 + $0x8] sm:$0xff]   ;;  %725 = vset.pattern.permute.xlu0 %v792_v28  ;;  %726 = vset.pattern.permute.xlu1 %v792_v28  ;;  %s310_s28 = scalar_lea.vmem %s926_s3, %s617_s15  ;;  %s306_s5 = scalar_lea.vmem %s925_s2, %s617_s15 }
  0x24   : > { %357 = vrot.lane.b32.xlu0 %v727_v3, %s791_s12  ;;  %654 = vmatpush3.bf16.msra.mxu1 %v727_v3  ;;  %v730_v6 = vld [vmem:[%s302_s11] sm:$0xff]   ;;  %s619_s6 = sshll.u32 %s941_s18, 1 }
  0x25   : > { %655 = vmatprep.subr.bf16.mxu1 %v789_v2  ;;  %353 = vrot.lane.b32.xlu1 %v729_v5, %s791_s12  ;;  %v474_v29 = vld [vmem:[%s310_s28] sm:$0xff]  ;;  %s316_s7 = sadd.s32 %s619_s6, %s943_s17 }
  0x26   : > { %v464_v33 = vld [vmem:[%s306_s5] sm:$0xff]  ;;  %s620_s8 = sshll.u32 %s316_s7, 2 }
  0x27   : > { %s318_s11 = scalar_lea.vmem %s927_s4, %s620_s8 }
  0x28   : > { %355 = vrot.lane.b32.xlu0 %v728_v4, %s791_s12  ;;  %656 = vmatpush3.bf16.msra.mxu1 %v728_v4 }
  0x29   : > { %657 = vmatprep.subr.bf16.mxu1 %v789_v2  ;;  %351 = vrot.lane.b32.xlu1 %v730_v6, %s791_s12 }
  0x2c   : > { %658 = vmatpush3.bf16.msra.mxu1 %v729_v5 }
  0x2d   : > { %659 = vmatprep.subr.bf16.mxu1 %v789_v2 }
  0x30   : > { %660 = vmatpush3.bf16.msra.mxu1 %v730_v6 }
  0x33   : > { %662 = vmatmul.mubr.msk.bf16.vlgmr.msra.gmra.mxu1 %vm363_vm1, %v328_v7 }
  0x96   : > { %v358_v8 = vpop.permute.xlu0 %357 }
  0x97   : > { %642 = vmatpush3.bf16.msra.mxu0 %v358_v8  ;;  %v354_v10 = vpop.permute.xlu1 %353 }
  0x98   : > { %643 = vmatprep.subr.bf16.mxu0 %v789_v2 }
  0x9a   : > { %v356_v9 = vpop.permute.xlu0 %355 }
  0x9b   : > { %644 = vmatpush3.bf16.msra.mxu0 %v356_v9  ;;  %v352_v11 = vpop.permute.xlu1 %351 }
  0x9c   : > { %645 = vmatprep.subr.bf16.mxu0 %v789_v2 }
  0x9f   : > { %646 = vmatpush3.bf16.msra.mxu0 %v354_v10 }
  0xa0   : > { %647 = vmatprep.subr.bf16.mxu0 %v789_v2 }
  0xa3   : > { %648 = vmatpush3.bf16.msra.mxu0 %v352_v11 }
  0xa6   : > { %650 = vmatmul.mubr.msk.bf16.vlgmr.msra.gmra.mxu0 %vm363_vm1, %v621_v12 }
  0xf3   : > { %v448_v13 = vpop.f32.mrf.mxu1 }
  0xf5   : > { %v663_v14 = vpop.f32.mrf.mxu1 }
  0xf7   : > { %v451_v15 = vpop.f32.mrf.mxu1 }
  0xf9   : > { %v664_v16 = vpop.f32.mrf.mxu1 }
 0x166   : > { %v401_v17 = vpop.f32.mrf.mxu0 }
 0x167   : > { %v449_v18 = vadd.f32 %v448_v13, %v401_v17 }
 0x168   : > { %v651_v19 = vpop.f32.mrf.mxu0 }
 0x169   : > { %v454_v20 = vsel %vm363_vm1, %v449_v18, 0.0 }
 0x16a   : > { %v404_v21 = vpop.f32.mrf.mxu0  ;;  %455 = vadd.xlane.f32.xlu0 %v454_v20 }
 0x16c   : > { %v652_v22 = vpop.f32.mrf.mxu0 }
 0x1f3   : > { %v456_v23 = vpop.xlane.xlu0 %455 }
 0x1f4   : > { %v457_v24 = vmul.f32 0.015625, %v456_v23 }
 0x1f6   : > { %v458_v25 = vsub.f32 %v449_v18, %v457_v24 }
 0x1f8   : > { %v459_v26 = vmul.f32 %v458_v25, %v458_v25 }
 0x1fa   : > { %v460_v27 = vsel %vm363_vm1, %v459_v26, 0.0 }
 0x1fb   : > { %461 = vadd.xlane.f32.xlu1 %v460_v27 }
 0x20c   : > { %477 = vperm.xlu1 %726, %v474_v29  }
 0x284   : > { %v462_v30 = vpop.xlane.xlu1 %461 }
 0x285   : > { %v463_v31 = vmul.f32 0.015625, %v462_v30 }
 0x287   : > { %v465_v32 = vadd.f32 1e-05, %v463_v31 }
 0x288   : > { %v478_v37 = vpop.permute.xlu1 %477 }
 0x289   : > { %731 = vrsqrt.f32 %v465_v32 }
 0x296   : > { %v732_v34 = vpop.eup %731 }
 0x297   : > { %v467_v35 = vmul.f32 %v732_v34, %v464_v33 }
 0x299   : > { %470 = vperm.xlu0 %725, %v467_v35  }
 0x314   : > { %v471_v36 = vpop.permute.xlu0 %470 }
 0x315   : > { %v473_v38 = vmul.f32 %v471_v36, %v458_v25 }
 0x317   : > { %v480_v39 = vadd.f32 %v478_v37, %v473_v38 }
 0x319   : > { %v481_v40 = vmax.f32 %v480_v39, 0.0 }
 0x31b   : > { %v482_v41 = vpack.c.bf16 %v481_v40, %v481_v40 }
 0x31d   : > { %484 = vst.msk [vmem:[%s318_s11] sm:$0xf] %vm483_vm2, %v482_v41 }
 0x31e PF: > { %s14_s21 = sadd.s32 1, %s787_s21   ;;  %s928_s15 = smov %s767_s16 }
 0x31f   : > { %p11_p12 = scmp.ge.s32.totalorder %s14_s21, 6   ;;  %s929_s16 = smov %s867_s26 }
 0x320   : > { %s930_s17 = smov %s779_s19  ;;  %s931_s18 = smov %s783_s20 }
 0x321   : > { %s932_s19 = smov %s935_s22  ;;  %s933_s20 = smov %s939_s23 }
 0x322   :  { %13 = sbr.rel (!%p11_p12) target bundleno = 4 (0x4), region = 122 }

// kernel: down_conv_forward.5
= control target key start
LH: loop header
LB: loop body
LE: loop exit
PB: predicated region body
PF: predicated region fallthrough
CT: control target
= control target key end

     0   :  { %s968_s15 = smov 0   ;;  %s970_s16 = smov 0   ;;  %s1099_s0 = inlined_call_operand.vmem [shape: bf16[2,128,20], index: 0, kind: input, shape index: {}]   ;;  %s1100_s1 = inlined_call_operand.vmem [shape: bf16[2,32,128], index: 1, kind: input, shape index: {}]   ;;  %s1101_s2 = inlined_call_operand.vmem [shape: f32[32,1], index: 2, kind: input, shape index: {}]   ;;  %s1102_s3 = inlined_call_operand.vmem [shape: f32[32,1], index: 3, kind: input, shape index: {}]   ;;  %s1103_s4 = inlined_call_operand.vmem [shape: f32[2,32,16], index: 4, kind: output, shape index: {}]  }
   0x1   :  { %s972_s17 = smov 0   ;;  %s974_s18 = smov 0  }
   0x2   :  { %s976_s19 = smov 0   ;;  %s978_s20 = smov 0  }
   0x3   :  { %s980_s21 = smov 0  }
   0x4 LB: > { %s23_s22 = sadd.s32 1, %s929_s19  ;;  %s26_s23 = sadd.s32 1, %s933_s20  ;;  %s937_s21 = sphi %s980_s21, %s14_s21   ;;  %s933_s20 = sphi %s978_s20, %s1109_s20   ;;  %s929_s19 = sphi %s976_s19, %s1108_s19   ;;  %s925_s18 = sphi %s974_s18, %s1107_s18   ;;  %s921_s17 = sphi %s972_s17, %s1106_s17   ;;  %s917_s16 = sphi %s970_s16, %s1105_s16   ;;  %s913_s15 = sphi %s968_s15, %s1104_s15  }
   0x5   : > { %p24_p0 = scmp.ge.s32.totalorder %s23_s22, 2  ;;  %s59_s24 = sadd.s32 1, %s917_s16 }
   0x6   : > { %p66_p1 = scmp.ne.s32.totalorder %s917_s16, %s913_s15  ;;  %p67_p2 = scmp.eq.s32.totalorder %s937_s21, 0 }
   0x7   : > { %s1111_s22 = smov (%p24_p0, %s23_s22), 0  ;;  %s1113_s23 = smov (!%p24_p0, %s26_s23), %s933_s20 }
   0x8   : > { %s56_s25 = ssub.s32 %s929_s19, %s1111_s22  ;;  %p68_p3 = por %p67_p2, %p66_p1 }
   0x9   : > { %p28_p4 = scmp.ge.s32.totalorder %s1113_s23, 2  ;;  %p57_p5 = scmp.eq.s32.totalorder %s56_s25, 0 }
   0xa   : > { %p718_p6 = scmp.ge.s32.totalorder %s937_s21, 4 }
   0xb   : > { %s1115_s23 = smov (%p28_p4, %s1113_s23), 0 }
   0xc   : > { %s1017_s26 = scalar_select %p57_p5, %s917_s16, %s59_s24  }
   0xd   : > { %172 = sbr.rel (%p718_p6) target bundleno = 23 (0x17), region = 16 }
  0x12   : > { %183 = sbr.rel (!%p68_p3) target bundleno = 23 (0x17), region = 24  ;;  %s185_s27 = sand.u32 (%p68_p3), 1, %s917_s16  }
  0x13   : > { %s747_s28 = sshll.u32 (%p68_p3), %s929_s19, 3  ;;  %s719_s29 = sshll.u32 (%p68_p3), %s185_s27, 4 }
  0x14   : > { %s190_s6 = scalar_lea.vmem (%p68_p3), %s1100_s1, %s747_s28  ;;  %s187_s7 = scalar_lea.vmem (%p68_p3), [#allocation2], %s719_s29 }
  0x15   : > { %v207_v0 = vld [vmem:[%s190_s6] sm:$0xff] (%p68_p3)   ;;  %v211_v1 = vld [vmem:[%s190_s6 + $0x10] sm:$0xff] (%p68_p3)  }
  0x16   : > { %208 = vst [vmem:[%s187_s7] sm:$0xff] (%p68_p3), %v207_v0   ;;  %212 = vst [vmem:[%s187_s7 + $0x8] sm:$0xff] (%p68_p3), %v211_v1  }
  0x17 PF: > { %p722_p7 = scmp.ge.s32.totalorder %s937_s21, 1  ;;  %p263_p8 = scmp.lt.s32.totalorder %s937_s21, 5 }
  0x19   : > { %p264_p9 = pnand %p722_p7, %p263_p8 }
  0x1a   : > { %p314_p10 = scmp.lt.s32.totalorder (!%p264_p9), %s925_s18, 1  ;;  %s940_s12 = smov (!%p264_p9), 124  }
  0x1b   : > { %267 = sbr.rel (%p264_p9) target bundleno = 818 (0x332), region = 73  ;;  %s270_s13 = sand.u32 (!%p264_p9), 1, %s913_s15  }
  0x1c   : > { %s1040_s14 = sshll.u32 (!%p264_p9), %s270_s13, 4  ;;  %s726_s15 = sshll.u32 (!%p264_p9), %s921_s17, 1 }
  0x1d   : > { %s272_s24 = scalar_lea.vmem (!%p264_p9), [#allocation2], %s1040_s14  ;;  %p321_p11 = scmp.lt.s32.totalorder (!%p264_p9), %s726_s15, 3 }
  0x20   : > { %v939_v2 = vmov 0.0   ;;  %s1117_s18 = smov (!%p314_p10, %s925_s18), 1  ;;  %vm941_vm0 = vmmov 0   ;;  %v877_v11 = vld [vmem:[%s272_s24] sm:$0xff]   ;;  %v878_v20 = vld [vmem:[%s272_s24 + $0x8] sm:$0xff]   ;;  %vm530_vm1 = vcmask 130048  }
  0x21   : > { %787 = vmatprep.subr.bf16.mxu1 %v939_v2  ;;  %767 = vmatprep.subr.bf16.mxu0 %v939_v2  ;;  %s748_s8 = sshll.u32 %s1117_s18, 6  ;;  %v942_v43 = vmov 0   ;;  %s1119_s15 = smov (!%p321_p11, %s726_s15), 3 }
  0x22   : > { %s318_s11 = scalar_lea.vmem %s1099_s0, %s748_s8  ;;  %803 = vmatprep.mubr.msk.bf16.mxu1 %vm941_vm0, %v939_v2  ;;  %783 = vmatprep.mubr.msk.bf16.mxu0 %vm941_vm0, %v939_v2  ;;  %s727_s25 = sshll.u32 %s1119_s15, 3 }
  0x23   : > { %v869_v3 = vld [vmem:[%s318_s11 + $0x38] sm:$0xff]   ;;  %v870_v4 = vld [vmem:[%s318_s11 + $0x30] sm:$0xff]   ;;  %v871_v5 = vld [vmem:[%s318_s11 + $0x28] sm:$0xff]   ;;  %867 = vset.pattern.permute.xlu1 %v942_v43  ;;  %868 = vset.pattern.permute.xlu0 %v942_v43  ;;  %s324_s29 = scalar_lea.vmem %s1101_s2, %s727_s25  ;;  %s330_s5 = scalar_lea.vmem %s1102_s3, %s727_s25 }
  0x24   : > { %424 = vrot.lane.b32.xlu0 %v869_v3, %s940_s12  ;;  %788 = vmatpush3.bf16.msra.mxu1 %v869_v3  ;;  %v872_v6 = vld [vmem:[%s318_s11 + $0x20] sm:$0xff]   ;;  %v873_v7 = vld [vmem:[%s318_s11 + $0x18] sm:$0xff]   ;;  %v874_v8 = vld [vmem:[%s318_s11 + $0x10] sm:$0xff]   ;;  %s731_s6 = sshll.u32 %s1117_s18, 2 }
  0x25   : > { %789 = vmatprep.subr.bf16.mxu1 %v939_v2  ;;  %420 = vrot.lane.b32.xlu1 %v871_v5, %s940_s12  ;;  %v875_v9 = vld [vmem:[%s318_s11 + $0x8] sm:$0xff]   ;;  %v876_v10 = vld [vmem:[%s318_s11] sm:$0xff]   ;;  %s338_s7 = sadd.s32 %s731_s6, %s1119_s15 }
  0x26   : > { %v551_v50 = vld [vmem:[%s324_s29] sm:$0xff]  ;;  %v552_v53 = vld [vmem:[%s324_s29 + $0x8] sm:$0xff]  ;;  %s732_s8 = sshll.u32 %s338_s7, 3 }
  0x27   : > { %v571_v55 = vld [vmem:[%s330_s5] sm:$0xff]  ;;  %v572_v57 = vld [vmem:[%s330_s5 + $0x8] sm:$0xff]  ;;  %s340_s11 = scalar_lea.vmem %s1103_s4, %s732_s8 }
  0x28   : > { %422 = vrot.lane.b32.xlu0 %v870_v4, %s940_s12  ;;  %790 = vmatpush3.bf16.msra.mxu1 %v870_v4 }
  0x29   : > { %791 = vmatprep.subr.bf16.mxu1 %v939_v2  ;;  %418 = vrot.lane.b32.xlu1 %v872_v6, %s940_s12 }
  0x2c   : > { %416 = vrot.lane.b32.xlu0 %v873_v7, %s940_s12  ;;  %792 = vmatpush3.bf16.msra.mxu1 %v871_v5 }
  0x2d   : > { %793 = vmatprep.subr.bf16.mxu1 %v939_v2  ;;  %414 = vrot.lane.b32.xlu1 %v874_v8, %s940_s12 }
  0x30   : > { %412 = vrot.lane.b32.xlu0 %v875_v9, %s940_s12  ;;  %794 = vmatpush3.bf16.msra.mxu1 %v872_v6 }
  0x31   : > { %795 = vmatprep.subr.bf16.mxu1 %v939_v2  ;;  %410 = vrot.lane.b32.xlu1 %v876_v10, %s940_s12 }
  0x34   : > { %796 = vmatpush3.bf16.msra.mxu1 %v873_v7 }
  0x35   : > { %797 = vmatprep.subr.bf16.mxu1 %v939_v2 }
  0x38   : > { %798 = vmatpush3.bf16.msra.mxu1 %v874_v8 }
  0x39   : > { %799 = vmatprep.subr.bf16.mxu1 %v939_v2 }
  0x3c   : > { %800 = vmatpush3.bf16.msra.mxu1 %v875_v9 }
  0x3d   : > { %801 = vmatprep.subr.bf16.mxu1 %v939_v2 }
  0x40   : > { %802 = vmatpush3.bf16.msra.mxu1 %v876_v10 }
  0x43   : > { %804 = vmatmul.mubr.bf16.vlgmr.msra.gmra.mxu1 %v877_v11 }
  0x96   : > { %v425_v12 = vpop.permute.xlu0 %424 }
  0x97   : > { %768 = vmatpush3.bf16.msra.mxu0 %v425_v12  ;;  %v421_v14 = vpop.permute.xlu1 %420 }
  0x98   : > { %769 = vmatprep.subr.bf16.mxu0 %v939_v2 }
  0x9a   : > { %v423_v13 = vpop.permute.xlu0 %422 }
  0x9b   : > { %770 = vmatpush3.bf16.msra.mxu0 %v423_v13  ;;  %v419_v15 = vpop.permute.xlu1 %418 }
  0x9c   : > { %771 = vmatprep.subr.bf16.mxu0 %v939_v2 }
  0x9e   : > { %v417_v16 = vpop.permute.xlu0 %416 }
  0x9f   : > { %772 = vmatpush3.bf16.msra.mxu0 %v421_v14  ;;  %v415_v17 = vpop.permute.xlu1 %414 }
  0xa0   : > { %773 = vmatprep.subr.bf16.mxu0 %v939_v2 }
  0xa2   : > { %v413_v18 = vpop.permute.xlu0 %412 }
  0xa3   : > { %774 = vmatpush3.bf16.msra.mxu0 %v419_v15  ;;  %v411_v19 = vpop.permute.xlu1 %410 }
  0xa4   : > { %775 = vmatprep.subr.bf16.mxu0 %v939_v2 }
  0xa7   : > { %776 = vmatpush3.bf16.msra.mxu0 %v417_v16 }
  0xa8   : > { %777 = vmatprep.subr.bf16.mxu0 %v939_v2 }
  0xab   : > { %778 = vmatpush3.bf16.msra.mxu0 %v415_v17 }
  0xac   : > { %779 = vmatprep.subr.bf16.mxu0 %v939_v2 }
  0xaf   : > { %780 = vmatpush3.bf16.msra.mxu0 %v413_v18 }
  0xb0   : > { %781 = vmatprep.subr.bf16.mxu0 %v939_v2 }
  0xb3   : > { %782 = vmatpush3.bf16.msra.mxu0 %v411_v19 }
  0xb6   : > { %784 = vmatmul.mubr.bf16.vlgmr.msra.gmra.mxu0 %v878_v20 }
 0x103   : > { %v523_v21 = vpop.f32.mrf.mxu1 }
 0x105   : > { %v805_v22 = vpop.f32.mrf.mxu1 }
 0x107   : > { %v526_v23 = vpop.f32.mrf.mxu1 }
 0x109   : > { %v806_v24 = vpop.f32.mrf.mxu1 }
 0x176   : > { %v468_v25 = vpop.f32.mrf.mxu0 }
 0x177   : > { %v524_v26 = vadd.f32 %v523_v21, %v468_v25 }
 0x178   : > { %v785_v27 = vpop.f32.mrf.mxu0 }
 0x179   : > { %v531_v28 = vsel %vm530_vm1, %v524_v26, 0.0 }
 0x17a   : > { %v471_v29 = vpop.f32.mrf.mxu0  ;;  %532 = vadd.xlane.f32.xlu0 %v531_v28 }
 0x17b   : > { %v527_v30 = vadd.f32 %v526_v23, %v471_v29 }
 0x17c   : > { %v786_v31 = vpop.f32.mrf.mxu0 }
 0x17d   : > { %v534_v32 = vsel %vm530_vm1, %v527_v30, 0.0 }
 0x17e   : > { %535 = vadd.xlane.f32.xlu1 %v534_v32 }
 0x203   : > { %v533_v33 = vpop.xlane.xlu0 %532 }
 0x204   : > { %v537_v34 = vmul.f32 0.0625, %v533_v33 }
 0x206   : > { %v539_v35 = vsub.f32 %v524_v26, %v537_v34 }
 0x207   : > { %v536_v36 = vpop.xlane.xlu1 %535 }
 0x208   : > { %v538_v37 = vmul.f32 0.0625, %v536_v36  ;;  %v541_v38 = vmul.f32 %v539_v35, %v539_v35 }
 0x20a   : > { %v540_v39 = vsub.f32 %v527_v30, %v538_v37  ;;  %v543_v40 = vsel %vm530_vm1, %v541_v38, 0.0 }
 0x20b   : > { %544 = vadd.xlane.f32.xlu0 %v543_v40 }
 0x20c   : > { %v542_v41 = vmul.f32 %v540_v39, %v540_v39 }
 0x20e   : > { %v546_v42 = vsel %vm530_vm1, %v542_v41, 0.0 }
 0x20f   : > { %547 = vadd.xlane.f32.xlu0 %v546_v42 }
 0x294   : > { %v545_v44 = vpop.xlane.xlu0 %544 }
 0x295   : > { %v549_v45 = vmul.f32 0.0625, %v545_v44 }
 0x297   : > { %v553_v46 = vadd.f32 1e-05, %v549_v45 }
 0x298   : > { %v548_v47 = vpop.xlane.xlu0 %547 }
 0x299   : > { %879 = vrsqrt.f32 %v553_v46  ;;  %v550_v48 = vmul.f32 0.0625, %v548_v47 }
 0x29b   : > { %v554_v49 = vadd.f32 1e-05, %v550_v48 }
 0x29d   : > { %881 = vrsqrt.f32 %v554_v49 }
 0x2a6   : > { %v880_v51 = vpop.eup %879 }
 0x2a7   : > { %v557_v52 = vmul.f32 %v880_v51, %v551_v50 }
 0x2a9   : > { %561 = vperm.xlu1 %867, %v557_v52  }
 0x2aa   : > { %v882_v54 = vpop.eup %881 }
 0x2ab   : > { %v558_v56 = vmul.f32 %v882_v54, %v552_v53 }
 0x2ad   : > { %575 = vperm.xlu1 %867, %v571_v55   ;;  %566 = vperm.xlu0 %868, %v558_v56  }
 0x2b1   : > { %580 = vperm.xlu1 %867, %v572_v57  }
 0x324   : > { %v562_v58 = vpop.permute.xlu1 %561 }
 0x325   : > { %v569_v59 = vmul.f32 %v562_v58, %v539_v35 }
 0x328   : > { %v567_v60 = vpop.permute.xlu0 %566  ;;  %v576_v61 = vpop.permute.xlu1 %575 }
 0x329   : > { %v583_v62 = vadd.f32 %v576_v61, %v569_v59  ;;  %v570_v63 = vmul.f32 %v567_v60, %v540_v39 }
 0x32b   : > { %v585_v0 = vmax.f32 %v583_v62, 0.0 }
 0x32c   : > { %v581_v1 = vpop.permute.xlu1 %580 }
 0x32d   : > { %587 = vst.msk [vmem:[%s340_s11] sm:$0xff] %vm530_vm1, %v585_v0  ;;  %v584_v2 = vadd.f32 %v581_v1, %v570_v63 }
 0x32f   : > { %v586_v3 = vmax.f32 %v584_v2, 0.0 }
 0x331   : > { %588 = vst.msk [vmem:[%s340_s11 + $0x8] sm:$0xff] %vm530_vm1, %v586_v3 }
 0x332 PF: > { %s14_s21 = sadd.s32 1, %s937_s21   ;;  %s1104_s15 = smov %s917_s16 }
 0x333   : > { %p11_p12 = scmp.ge.s32.totalorder %s14_s21, 6   ;;  %s1105_s16 = smov %s1017_s26 }
 0x334   : > { %s1106_s17 = smov %s929_s19  ;;  %s1107_s18 = smov %s933_s20 }
 0x335   : > { %s1108_s19 = smov %s1111_s22  ;;  %s1109_s20 = smov %s1115_s23 }
 0x336   :  { %13 = sbr.rel (!%p11_p12) target bundleno = 4 (0x4), region = 122 }

</bundles_post_ra>
